<compile_context>
chip_gen: v5e
topology: v5e:2x2
jax: 0.10.0
libtpu: 0.0.40
codegen_flags: <defaults>
</compile_context>

<pallas_src>
import math

import jax
import jax.numpy as jnp
from jax.experimental import pallas as pl
from jax.experimental.pallas import tpu as pltpu

_LANE = 128
_CHUNK_BYTES = 16 * 1024 * 1024   # per-DMA chunk; up to 2 in flight
_MIN_KERNEL_BYTES = 1 << 20       # below this, reshape even if use_kernel=True


def _choose_slab(total):
    """Factor `total` elements into a (rows, L) slab with L a multiple of 128.

    The data never enters VMEM, so L is only an addressing convenience; a
    modest L in [128, 1024] keeps row-level chunking flexible.
    Returns (rows, L) or None if no 128-multiple factorization exists.
    """
    if total == 0 or total % _LANE != 0:
        return None
    for L in (1024, 512, 256, 128):
        if total % L == 0:
            return total // L, L
    return None  # unreachable: 128 always divides here


def _build_dma_copy_kernel(rows, L, itemsize):
    """Build a chunked HBM->HBM copy kernel with up to two DMAs in flight."""
    chunk_rows = max(1, min(rows, _CHUNK_BYTES // (L * itemsize)))
    n_full = rows // chunk_rows           # >= 1 since chunk_rows <= rows
    rem = rows - n_full * chunk_rows      # static tail row count

    def kernel(x_hbm, o_hbm, sem):
        def chunk(start, size, slot):
            return pltpu.make_async_copy(
                x_hbm.at[pl.ds(start, size), :],
                o_hbm.at[pl.ds(start, size), :],
                sem.at[slot],
            )

        # Prime up to two outstanding full-size chunk DMAs.
        chunk(0, chunk_rows, 0).start()
        if n_full >= 2:
            chunk(chunk_rows, chunk_rows, 1).start()

        @pl.loop(0, n_full)
        def _(i):
            slot = i % 2
            # Wait for chunk i: the wait descriptor only needs the matching
            # shape and semaphore slot; the offsets are irrelevant.
            chunk(0, chunk_rows, slot).wait()

            @pl.when(i + 2 < n_full)
            def _():
                chunk((i + 2) * chunk_rows, chunk_rows, slot).start()

        if rem > 0:
            # Static tail (rows not a multiple of chunk_rows).
            tail = chunk(n_full * chunk_rows, rem, 0)
            tail.start()
            tail.wait()

    return kernel


def deflatten(x, shape, *, use_kernel=False, min_kernel_bytes=_MIN_KERNEL_BYTES):
    """Equivalent of torch: x.view(x.size(0), *shape)."""
    B = x.shape[0]
    N = math.prod(x.shape[1:])
    assert N == math.prod(shape), f"cannot view {x.shape} as (B, {shape})"
    out_shape = (B,) + tuple(shape)

    if not use_kernel:
        # Production path: metadata-only view — zero HBM traffic.
        return x.reshape(out_shape)

    itemsize = jnp.dtype(x.dtype).itemsize
    total = B * N
    total_bytes = total * itemsize

    # Kernel launch + DMA issue dwarf the copy for tiny inputs.
    if total_bytes < min_kernel_bytes:
        return x.reshape(out_shape)

    slab = _choose_slab(total)
    if slab is None:
        # TODO(synk): no 128-multiple factorization of `total`; the view is
        # metadata-only anyway, so return the zero-cost reshape.
        return x.reshape(out_shape)

    rows, L = slab
    flat = x.reshape(rows, L)  # metadata-only relayout to the 2D slab

    out = pl.pallas_call(
        _build_dma_copy_kernel(rows, L, itemsize),
        out_shape=jax.ShapeDtypeStruct((rows, L), x.dtype),
        in_specs=[pl.BlockSpec(memory_space=pl.ANY)],
        out_specs=pl.BlockSpec(memory_space=pl.ANY),
        scratch_shapes=[pltpu.SemaphoreType.DMA((2,))],
        # Bandwidth-only custom call: tell XLA's scheduler the truth.
        cost_estimate=pl.CostEstimate(
            flops=0, transcendentals=0, bytes_accessed=2 * total_bytes),
    )(flat)

    return out.reshape(out_shape)  # metadata-only


class DeFlatten:
    """JAX/Pallas port of the PyTorch DeFlatten module."""

    def __init__(self, shape, *, use_kernel=False,
                 min_kernel_bytes=_MIN_KERNEL_BYTES):
        self.shape = tuple(shape)
        self.use_kernel = use_kernel
        self.min_kernel_bytes = min_kernel_bytes

    def __call__(self, x):
        return deflatten(x, self.shape, use_kernel=self.use_kernel,
                         min_kernel_bytes=self.min_kernel_bytes)


if __name__ == "__main__":
    key = jax.random.PRNGKey(0)

    B = 2
    target_shape = (4, 16, 16)            # (C, H, W)
    N = math.prod(target_shape)           # 1024

    x = jax.random.normal(key, (B, N), dtype=jnp.float32)
    ref = x.reshape((B,) + target_shape)

    # Production path: metadata-only view.
    y_view = jax.block_until_ready(DeFlatten(target_shape)(x))
    assert y_view.shape == (B,) + target_shape, y_view.shape
    assert bool(jnp.all(y_view == ref))

    # Explicit-copy path: force the HBM->HBM DMA kernel on this tiny input.
    mod = DeFlatten(target_shape, use_kernel=True, min_kernel_bytes=0)
    y = jax.block_until_ready(mod(x))

    assert y.shape == (B,) + target_shape, y.shape
    assert y.dtype == x.dtype
    assert bool(jnp.all(y == ref))

    print("KERNEL_OK")
</pallas_src>

<mosaic_0001>
module attributes {stable_mosaic.version = 11 : i64} {
  func.func @kernel(%arg0: memref<2x1024xf32, #tpu.memory_space<any>>, %arg1: memref<2x1024xf32, #tpu.memory_space<any>>, %arg2: memref<2x!tpu.dma_semaphore, #tpu.memory_space<semaphore_mem>>) attributes {dimension_semantics = [], scalar_prefetch = 0 : i64, scratch_operands = 1 : i64, tpu.core_type = #tpu.core_type<tc>} {
    %c0_i32 = arith.constant 0 : i32
    %c0_i32_0 = arith.constant 0 : i32
    %c0_i32_1 = arith.constant 0 : i32
    %0 = tpu.memref_slice %arg0[%c0_i32_0, %c0_i32_1] : memref<2x1024xf32, #tpu.memory_space<any>> -> memref<2x1024xf32, #tpu.memory_space<any>>
    %c0_i32_2 = arith.constant 0 : i32
    %c0_i32_3 = arith.constant 0 : i32
    %1 = tpu.memref_slice %arg1[%c0_i32_2, %c0_i32_3] : memref<2x1024xf32, #tpu.memory_space<any>> -> memref<2x1024xf32, #tpu.memory_space<any>>
    %2 = tpu.memref_slice %arg2[%c0_i32] : memref<2x!tpu.dma_semaphore, #tpu.memory_space<semaphore_mem>> -> memref<1x!tpu.dma_semaphore, #tpu.memory_space<semaphore_mem>>
    %3 = tpu.memref_squeeze %2 : memref<1x!tpu.dma_semaphore, #tpu.memory_space<semaphore_mem>> -> memref<!tpu.dma_semaphore, #tpu.memory_space<semaphore_mem>>
    tpu.enqueue_dma source(%0 : memref<2x1024xf32, #tpu.memory_space<any>>) target(%1 : memref<2x1024xf32, #tpu.memory_space<any>>) target_semaphore(%3 : memref<!tpu.dma_semaphore, #tpu.memory_space<semaphore_mem>>)
    %c0_i32_4 = arith.constant 0 : i32
    %c1_i32 = arith.constant 1 : i32
    %4 = arith.muli %c0_i32_4, %c1_i32 : i32
    %c0_i32_5 = arith.constant 0 : i32
    %5 = arith.addi %c0_i32_5, %4 : i32
    %c2_i32 = arith.constant 2 : i32
    %c0_i32_6 = arith.constant 0 : i32
    %6 = arith.cmpi eq, %c2_i32, %c0_i32_6 : i32
    %c1_i32_7 = arith.constant 1 : i32
    %7 = arith.select %6, %c1_i32_7, %c2_i32 : i32
    %8 = arith.remsi %5, %7 : i32
    %c0_i32_8 = arith.constant 0 : i32
    %9 = arith.cmpi ne, %8, %c0_i32_8 : i32
    %c0_i32_9 = arith.constant 0 : i32
    %10 = arith.cmpi slt, %8, %c0_i32_9 : i32
    %c0_i32_10 = arith.constant 0 : i32
    %11 = arith.cmpi slt, %7, %c0_i32_10 : i32
    %12 = arith.xori %10, %11 : i1
    %13 = arith.andi %12, %9 : i1
    %14 = arith.addi %8, %7 : i32
    %15 = arith.select %13, %14, %8 : i32
    %c0_i32_11 = arith.constant 0 : i32
    %c0_i32_12 = arith.constant 0 : i32
    %16 = tpu.memref_slice %arg0[%c0_i32_11, %c0_i32_12] : memref<2x1024xf32, #tpu.memory_space<any>> -> memref<2x1024xf32, #tpu.memory_space<any>>
    %c0_i32_13 = arith.constant 0 : i32
    %c0_i32_14 = arith.constant 0 : i32
    %17 = tpu.memref_slice %arg1[%c0_i32_13, %c0_i32_14] : memref<2x1024xf32, #tpu.memory_space<any>> -> memref<2x1024xf32, #tpu.memory_space<any>>
    %18 = tpu.memref_slice %arg2[%15] : memref<2x!tpu.dma_semaphore, #tpu.memory_space<semaphore_mem>> -> memref<1x!tpu.dma_semaphore, #tpu.memory_space<semaphore_mem>>
    %19 = tpu.memref_squeeze %18 : memref<1x!tpu.dma_semaphore, #tpu.memory_space<semaphore_mem>> -> memref<!tpu.dma_semaphore, #tpu.memory_space<semaphore_mem>>
    tpu.wait_dma2 semaphore(%19 : memref<!tpu.dma_semaphore, #tpu.memory_space<semaphore_mem>>) src(%16 : memref<2x1024xf32, #tpu.memory_space<any>>) dst(%17 : memref<2x1024xf32, #tpu.memory_space<any>>)
    %c2_i32_15 = arith.constant 2 : i32
    %20 = arith.addi %5, %c2_i32_15 : i32
    %c1_i32_16 = arith.constant 1 : i32
    %21 = arith.cmpi slt, %20, %c1_i32_16 : i32
    %22 = arith.extui %21 : i1 to i32
    %c0_i32_17 = arith.constant 0 : i32
    %23 = arith.cmpi ne, %22, %c0_i32_17 : i32
    scf.if %23 {
      %c2_i32_19 = arith.constant 2 : i32
      %24 = arith.addi %5, %c2_i32_19 : i32
      %c2_i32_20 = arith.constant 2 : i32
      %25 = arith.muli %24, %c2_i32_20 : i32
      %c0_i32_21 = arith.constant 0 : i32
      %26 = tpu.memref_slice %arg0[%25, %c0_i32_21] : memref<2x1024xf32, #tpu.memory_space<any>> -> memref<2x1024xf32, #tpu.memory_space<any>>
      %c0_i32_22 = arith.constant 0 : i32
      %27 = tpu.memref_slice %arg1[%25, %c0_i32_22] : memref<2x1024xf32, #tpu.memory_space<any>> -> memref<2x1024xf32, #tpu.memory_space<any>>
      %28 = tpu.memref_slice %arg2[%15] : memref<2x!tpu.dma_semaphore, #tpu.memory_space<semaphore_mem>> -> memref<1x!tpu.dma_semaphore, #tpu.memory_space<semaphore_mem>>
      %29 = tpu.memref_squeeze %28 : memref<1x!tpu.dma_semaphore, #tpu.memory_space<semaphore_mem>> -> memref<!tpu.dma_semaphore, #tpu.memory_space<semaphore_mem>>
      tpu.enqueue_dma source(%26 : memref<2x1024xf32, #tpu.memory_space<any>>) target(%27 : memref<2x1024xf32, #tpu.memory_space<any>>) target_semaphore(%29 : memref<!tpu.dma_semaphore, #tpu.memory_space<semaphore_mem>>)
    } else {
    }
    %c1_i32_18 = arith.constant 1 : i32
    return
  }
}

</mosaic_0001>

<bundles_post_ra>
// kernel: tpu_custom_call.1
= control target key start
LH: loop header
LB: loop body
LE: loop exit
PB: predicated region body
PF: predicated region fallthrough
CT: control target
= control target key end

     0   :  { %s41_s12 = smov [#allocation2]   ;;  %s42_s13 = smov [#allocation3]   ;;  %s60_s0 = inlined_call_operand.hbm [shape: f32[2,1024], index: 0, kind: input, shape index: {}]   ;;  %s61_s1 = inlined_call_operand.hbm [shape: f32[2,1024], index: 1, kind: output, shape index: {}]  }
   0x1   :  { %s10_s8 = sshll.u32 %s60_s0, 4  ;;  %s12_s11 = sshll.u32 %s61_s1, 4  ;;  %s11_s8 = int_to_ptr.hbm [resolvable:$true] %s10_s8  ;;  %s13_s11 = int_to_ptr.hbm [resolvable:$true] %s12_s11 }
   0x2   :  { %s43_s14 = smov 0  }
   0x3   :  { %16 = dma.general %s11_s8, 256, %s13_s11, %s41_s12, %s42_s13, [#allocation4], %s43_s14, 0  }
   0x4   :  { %39 = dma.done.wait [#allocation2], 256 }
   0x5   :  { %40 = vsyncadd [#allocation2], 4294967040 }
   0x6   :  { %21 = vsyncmov [#allocation2] }
   0x9   :  { %s22_s15 = vpop.sfrf %21 }
   0xa   :  { %p34_p0 = scmp.ne.s32.totalorder %s22_s15, 0 }
   0xc   :  { %26 = shalt.err (%p34_p0)  }
   0xd   :  { %28 = vsyncmov [#allocation2 + $0x1] }
  0x10   :  { %s29_s16 = vpop.sfrf %28 }
  0x11   :  { %p35_p1 = scmp.ne.s32.totalorder %s29_s16, 0 }
  0x13   :  { %33 = shalt.err (%p35_p1)  }

</bundles_post_ra>
